<compile_context>
chip_gen: v5e
topology: v5e:2x2
jax: 0.10.0
libtpu: 0.0.40
codegen_flags: <defaults>
</compile_context>

<pallas_src>
import functools

import jax
import jax.numpy as jnp
from jax.experimental import pallas as pl
from jax.experimental.pallas import tpu as pltpu

LANE = 128  # width of the fused layer-2 matmul output (lane-dense for the MXU)


def _round_up(x, m):
    return ((x + m - 1) // m) * m


# ----------------------------------------------------------------------------
# Kernel
# ----------------------------------------------------------------------------
def _actor_critic_kernel(x_ref, w1_ref, b1_ref, w2_ref, b2_ref, out_ref, *,
                         out_rows):
    """Fused ActorCritic forward on one batch tile.

    out_ref is a TRANSPOSED narrow slab (out_rows, tb):
      row 0               : critic value (no activation)
      rows 1..num_outputs : actor mu (tanh)
      remaining rows      : padding
    """
    x = x_ref[...]  # (tb, num_inputs), bf16

    # Fused layer 1 (critic + actor hidden) — one bf16 MXU pass, f32 accumulate.
    h = jnp.dot(x, w1_ref[...], preferred_element_type=jnp.float32) + b1_ref[...]
    h = jnp.maximum(h, 0.0)

    # Fused layer 2 (block-diagonal [value | mu | 0-pad]) — one bf16 MXU pass.
    y = (jnp.dot(h.astype(jnp.bfloat16), w2_ref[...],
                 preferred_element_type=jnp.float32) + b2_ref[...])   # (tb, 128)

    # Transpose on the XLU (idle slot here) and keep only the first out_rows
    # rows -> narrow lane-dense writeback instead of the full 128-wide slab.
    yt = y.T[:out_rows, :]                                            # (out_rows, tb)

    # tanh only on the kept rows; row 0 (the value) stays linear.
    row = jax.lax.broadcasted_iota(jnp.int32, yt.shape, dimension=0)
    out_ref[...] = jnp.where(row == 0, yt, jnp.tanh(yt)).astype(out_ref.dtype)


# ----------------------------------------------------------------------------
# Wrapper
# ----------------------------------------------------------------------------
def actor_critic_forward(x, fused, num_outputs, *, tile_b=1024):
    """Runs the fused ActorCritic forward; returns (mu, std, value)."""
    B, num_inputs = x.shape
    hidden2 = fused["w1"].shape[1]              # 2 * hidden
    out_rows = _round_up(1 + num_outputs, 8)    # value + mu rows, sublane-padded
    assert out_rows <= LANE

    # --- batch tiling --------------------------------------------------------
    # tb must be a multiple of 128: it is the *lane* dim of the transposed
    # output. Prefer >= 2 tiles when the batch allows it so the "parallel"
    # grid axis shards across both TensorCores on v7x megacore.
    pB0 = _round_up(B, 128)
    n_blocks = pB0 // 128
    n_tiles = pl.cdiv(pB0, tile_b)
    if n_tiles < 2 and n_blocks >= 2:
        n_tiles = 2
    blocks_per_tile = pl.cdiv(n_blocks, n_tiles)
    tb = blocks_per_tile * 128
    n_tiles = pl.cdiv(n_blocks, blocks_per_tile)
    pB = tb * n_tiles

    # bf16 operands (f32 accumulation in-kernel). Skip the pad when not needed.
    # TODO(synk): for the fully pad-free path, have the rollout producer emit
    # x already bf16 and batch-padded to a multiple of 128.
    x_bf16 = x.astype(jnp.bfloat16)
    x_p = x_bf16 if pB == B else jnp.pad(x_bf16, ((0, pB - B), (0, 0)))

    w1, b1, w2, b2 = fused["w1"], fused["b1"], fused["w2"], fused["b2"]

    cost = pl.CostEstimate(
        flops=2 * pB * (num_inputs * hidden2 + hidden2 * LANE),
        transcendentals=pB * out_rows,
        bytes_accessed=(x_p.size * 2 + w1.size * 2 + w2.size * 2
                        + b1.size * 4 + b2.size * 4 + out_rows * pB * 4),
    )

    kernel = functools.partial(_actor_critic_kernel, out_rows=out_rows)

    out = pl.pallas_call(
        kernel,
        out_shape=jax.ShapeDtypeStruct((out_rows, pB), jnp.float32),
        grid=(n_tiles,),
        in_specs=[
            # x: batch-tiled (double-buffered by the BlockSpec pipeline).
            pl.BlockSpec((tb, num_inputs), lambda i: (i, 0)),
            # weights / biases: full blocks, constant index_map -> VMEM-resident.
            pl.BlockSpec(w1.shape, lambda i: (0, 0)),
            pl.BlockSpec(b1.shape, lambda i: (0, 0)),
            pl.BlockSpec(w2.shape, lambda i: (0, 0)),
            pl.BlockSpec(b2.shape, lambda i: (0, 0)),
        ],
        # Narrow, lane-dense transposed output slab, batch-tiled along lanes.
        out_specs=pl.BlockSpec((out_rows, tb), lambda i: (0, i)),
        compiler_params=pltpu.CompilerParams(
            dimension_semantics=("parallel",),
        ),
        cost_estimate=cost,
    )(x_p, w1, b1, w2, b2)

    value = out[0, :B].reshape(B, 1)
    mu = out[1:1 + num_outputs, :B].T
    # std = exp(log_std).expand_as(mu) is batch-independent -> computed here.
    std = jnp.broadcast_to(jnp.exp(fused["log_std"]), mu.shape)
    return mu, std, value


# ----------------------------------------------------------------------------
# Parameters
# ----------------------------------------------------------------------------
def init_params(key, num_inputs, num_outputs, hidden_size, std=0.0):
    """Matches init_weights: Linear.weight ~ N(0, 0.1), Linear.bias = 0.1.

    Weights stored as (in_features, out_features), biases as (1, out_features).
    """
    k1, k2, k3, k4 = jax.random.split(key, 4)

    def lin(k, fan_in, fan_out):
        w = 0.1 * jax.random.normal(k, (fan_in, fan_out), dtype=jnp.float32)
        b = jnp.full((1, fan_out), 0.1, dtype=jnp.float32)
        return w, b

    wc1, bc1 = lin(k1, num_inputs, hidden_size)
    wc2, bc2 = lin(k2, hidden_size, 1)
    wa1, ba1 = lin(k3, num_inputs, hidden_size)
    wa2, ba2 = lin(k4, hidden_size, num_outputs)
    log_std = jnp.full((1, num_outputs), std, dtype=jnp.float32)

    return dict(
        wc1=wc1, bc1=bc1, wc2=wc2, bc2=bc2,
        wa1=wa1, ba1=ba1, wa2=wa2, ba2=ba2,
        log_std=log_std,
    )


def fuse_params(p, num_outputs):
    """Builds the fused/padded (bf16) weights consumed by the kernel (offline)."""
    hidden = p["wc1"].shape[1]
    assert 1 + num_outputs <= LANE

    # Layer 1: side-by-side concat -> (num_inputs, 2*hidden).
    w1 = jnp.concatenate([p["wc1"], p["wa1"]], axis=1)
    b1 = jnp.concatenate([p["bc1"], p["ba1"]], axis=1)

    # Layer 2: block-diagonal, padded to a lane-dense 128-wide MXU output.
    #   rows [0, hidden)        -> col 0            (critic value head)
    #   rows [hidden, 2*hidden) -> cols 1..num_out  (actor mu head)
    w2 = jnp.zeros((2 * hidden, LANE), jnp.float32)
    w2 = w2.at[:hidden, 0:1].set(p["wc2"])
    w2 = w2.at[hidden:, 1:1 + num_outputs].set(p["wa2"])

    b2 = jnp.zeros((1, LANE), jnp.float32)
    b2 = b2.at[0, 0].set(p["bc2"][0, 0])
    b2 = b2.at[0, 1:1 + num_outputs].set(p["ba2"][0])

    return dict(
        w1=w1.astype(jnp.bfloat16), b1=b1,
        w2=w2.astype(jnp.bfloat16), b2=b2,
        log_std=p["log_std"],
    )


# ----------------------------------------------------------------------------
# References (for correctness checks)
# ----------------------------------------------------------------------------
def reference_forward(x, p):
    """Exact f32 equivalent of the PyTorch forward."""
    hc = jnp.maximum(x @ p["wc1"] + p["bc1"], 0.0)
    value = hc @ p["wc2"] + p["bc2"]
    ha = jnp.maximum(x @ p["wa1"] + p["ba1"], 0.0)
    mu = jnp.tanh(ha @ p["wa2"] + p["ba2"])
    std = jnp.broadcast_to(jnp.exp(p["log_std"]), mu.shape)
    return mu, std, value


def reference_forward_bf16(x, fused, num_outputs):
    """Emulates the kernel's bf16-operand / f32-accumulation arithmetic."""
    xb = x.astype(jnp.bfloat16)
    h = jnp.maximum(
        jnp.dot(xb, fused["w1"], preferred_element_type=jnp.float32) + fused["b1"],
        0.0)
    y = (jnp.dot(h.astype(jnp.bfloat16), fused["w2"],
                 preferred_element_type=jnp.float32) + fused["b2"])
    value = y[:, 0:1]
    mu = jnp.tanh(y[:, 1:1 + num_outputs])
    std = jnp.broadcast_to(jnp.exp(fused["log_std"]), mu.shape)
    return mu, std, value


if __name__ == "__main__":
    # Walker2DPyBulletEnv-v0: observation dim 22, action dim 6.
    num_inputs = 22
    num_outputs = 6
    hidden_size = 256

    key = jax.random.PRNGKey(0)
    k_param, k_x1, k_x2 = jax.random.split(key, 3)

    raw = init_params(k_param, num_inputs, num_outputs, hidden_size, std=0.0)
    fused = fuse_params(raw, num_outputs)

    # --- small single-tile batch ---------------------------------------------
    batch = 4
    x = jax.random.normal(k_x1, (batch, num_inputs), dtype=jnp.float32)
    mu, std, value = actor_critic_forward(x, fused, num_outputs)
    jax.block_until_ready((mu, std, value))

    mu_b, _, value_b = reference_forward_bf16(x, fused, num_outputs)
    mu_r, std_r, value_r = reference_forward(x, raw)

    assert mu.shape == (batch, num_outputs)
    assert std.shape == (batch, num_outputs)
    assert value.shape == (batch, 1)
    # Tight check vs a reference using the same bf16/f32 arithmetic as the kernel.
    assert jnp.allclose(mu, mu_b, atol=5e-3)
    assert jnp.allclose(value, value_b, atol=5e-3)
    # Loose check vs the exact f32 PyTorch-equivalent reference (bf16 operands).
    assert jnp.allclose(mu, mu_r, atol=5e-2)
    assert jnp.allclose(value, value_r, atol=8e-2)
    assert jnp.allclose(std, std_r, atol=1e-6)

    # --- multi-tile batch (exercises padding + >=2-tile megacore path) --------
    batch2 = 260
    x2 = jax.random.normal(k_x2, (batch2, num_inputs), dtype=jnp.float32)
    mu2, std2, value2 = actor_critic_forward(x2, fused, num_outputs)
    jax.block_until_ready((mu2, std2, value2))

    mu2_b, _, value2_b = reference_forward_bf16(x2, fused, num_outputs)
    assert mu2.shape == (batch2, num_outputs)
    assert std2.shape == (batch2, num_outputs)
    assert value2.shape == (batch2, 1)
    assert jnp.allclose(mu2, mu2_b, atol=5e-3)
    assert jnp.allclose(value2, value2_b, atol=5e-3)

    print("KERNEL_OK")
</pallas_src>

<mosaic_0001>
module attributes {stable_mosaic.version = 11 : i64} {
  func.func @_actor_critic_kernel(%arg0: i32, %arg1: memref<128x22xbf16, #tpu.memory_space<vmem>>, %arg2: memref<22x512xbf16, #tpu.memory_space<vmem>>, %arg3: memref<1x512xf32, #tpu.memory_space<vmem>>, %arg4: memref<512x128xbf16, #tpu.memory_space<vmem>>, %arg5: memref<1x128xf32, #tpu.memory_space<vmem>>, %arg6: memref<8x128xf32, #tpu.memory_space<vmem>>) attributes {dimension_semantics = [#tpu.dimension_semantics<parallel>], iteration_bounds = array<i64: 1>, scalar_prefetch = 0 : i64, scratch_operands = 0 : i64, tpu.core_type = #tpu.core_type<tc>, window_params = [{transform_indices = @transform_0, window_bounds = array<i64: 128, 22>}, {pipeline_mode = #tpu.pipeline_mode<synchronous>, transform_indices = @transform_1, window_bounds = array<i64: 22, 512>}, {pipeline_mode = #tpu.pipeline_mode<synchronous>, transform_indices = @transform_2, window_bounds = array<i64: 1, 512>}, {pipeline_mode = #tpu.pipeline_mode<synchronous>, transform_indices = @transform_3, window_bounds = array<i64: 512, 128>}, {pipeline_mode = #tpu.pipeline_mode<synchronous>, transform_indices = @transform_4, window_bounds = array<i64: 1, 128>}, {transform_indices = @transform_5, window_bounds = array<i64: 8, 128>}]} {
    %c0 = arith.constant 0 : index
    %c0_0 = arith.constant 0 : index
    %0 = vector.load %arg1[%c0, %c0_0] : memref<128x22xbf16, #tpu.memory_space<vmem>>, vector<128x22xbf16>
    %c0_1 = arith.constant 0 : index
    %c0_2 = arith.constant 0 : index
    %1 = vector.load %arg2[%c0_1, %c0_2] : memref<22x512xbf16, #tpu.memory_space<vmem>>, vector<22x512xbf16>
    %cst = arith.constant dense<0.000000e+00> : vector<128x512xf32>
    %2 = tpu.matmul %0, %1, %cst {dimension_numbers = #tpu.dot_dimension_numbers<[1], [0], [0], [1], [0, 0, 1, 1], [], []>} : vector<128x22xbf16>, vector<22x512xbf16>, vector<128x512xf32> -> vector<128x512xf32>
    %c0_3 = arith.constant 0 : index
    %c0_4 = arith.constant 0 : index
    %3 = vector.load %arg3[%c0_3, %c0_4] : memref<1x512xf32, #tpu.memory_space<vmem>>, vector<1x512xf32>
    %4 = vector.broadcast %3 : vector<1x512xf32> to vector<128x512xf32>
    %5 = arith.addf %2, %4 : vector<128x512xf32>
    %cst_5 = arith.constant 0.000000e+00 : f32
    %6 = vector.broadcast %cst_5 : f32 to vector<128x512xf32>
    %7 = arith.maximumf %5, %6 : vector<128x512xf32>
    %8 = arith.truncf %7 : vector<128x512xf32> to vector<128x512xbf16>
    %c0_6 = arith.constant 0 : index
    %c0_7 = arith.constant 0 : index
    %9 = vector.load %arg4[%c0_6, %c0_7] : memref<512x128xbf16, #tpu.memory_space<vmem>>, vector<512x128xbf16>
    %cst_8 = arith.constant dense<0.000000e+00> : vector<128x128xf32>
    %10 = tpu.matmul %8, %9, %cst_8 {dimension_numbers = #tpu.dot_dimension_numbers<[1], [0], [0], [1], [0, 0, 1, 1], [], []>} : vector<128x512xbf16>, vector<512x128xbf16>, vector<128x128xf32> -> vector<128x128xf32>
    %c0_9 = arith.constant 0 : index
    %c0_10 = arith.constant 0 : index
    %11 = vector.load %arg5[%c0_9, %c0_10] : memref<1x128xf32, #tpu.memory_space<vmem>>, vector<1x128xf32>
    %12 = vector.broadcast %11 : vector<1x128xf32> to vector<128x128xf32>
    %13 = arith.addf %10, %12 : vector<128x128xf32>
    %14 = tpu.transpose %13, [1, 0] : vector<128x128xf32> -> vector<128x128xf32>
    %15 = vector.extract_strided_slice %14 {offsets = [0, 0], sizes = [8, 128], strides = [1, 1]} : vector<128x128xf32> to vector<8x128xf32>
    %16 = tpu.iota {dimensions = array<i32: 0>} : vector<8x128xi32>
    %c0_i32 = arith.constant 0 : i32
    %17 = vector.broadcast %c0_i32 : i32 to vector<8x128xi32>
    %18 = arith.cmpi eq, %16, %17 : vector<8x128xi32>
    %19 = math.tanh %15 : vector<8x128xf32>
    %20 = arith.select %18, %15, %19 : vector<8x128xi1>, vector<8x128xf32>
    %c0_11 = arith.constant 0 : index
    %c0_12 = arith.constant 0 : index
    %21 = vector.load %arg6[%c0_11, %c0_12] : memref<8x128xf32, #tpu.memory_space<vmem>>, vector<8x128xf32>
    tpu.vector_store %arg6[%c0_11, %c0_12], %20 {strides = array<i32>} : memref<8x128xf32, #tpu.memory_space<vmem>>, vector<8x128xf32>,
    return
  }
  func.func @transform_0(%arg0: i32) -> (i32, i32) {
    %c0_i32 = arith.constant 0 : i32
    %c0_i32_0 = arith.constant 0 : i32
    return %arg0, %c0_i32 : i32, i32
  }
  func.func @transform_1(%arg0: i32) -> (i32, i32) {
    %c0_i32 = arith.constant 0 : i32
    %c0_i32_0 = arith.constant 0 : i32
    %c0_i32_1 = arith.constant 0 : i32
    return %c0_i32, %c0_i32_0 : i32, i32
  }
  func.func @transform_2(%arg0: i32) -> (i32, i32) {
    %c0_i32 = arith.constant 0 : i32
    %c0_i32_0 = arith.constant 0 : i32
    %c0_i32_1 = arith.constant 0 : i32
    return %c0_i32, %c0_i32_0 : i32, i32
  }
  func.func @transform_3(%arg0: i32) -> (i32, i32) {
    %c0_i32 = arith.constant 0 : i32
    %c0_i32_0 = arith.constant 0 : i32
    %c0_i32_1 = arith.constant 0 : i32
    return %c0_i32, %c0_i32_0 : i32, i32
  }
  func.func @transform_4(%arg0: i32) -> (i32, i32) {
    %c0_i32 = arith.constant 0 : i32
    %c0_i32_0 = arith.constant 0 : i32
    %c0_i32_1 = arith.constant 0 : i32
    return %c0_i32, %c0_i32_0 : i32, i32
  }
  func.func @transform_5(%arg0: i32) -> (i32, i32) {
    %c0_i32 = arith.constant 0 : i32
    %c0_i32_0 = arith.constant 0 : i32
    return %c0_i32, %arg0 : i32, i32
  }
}

</mosaic_0001>

<bundles_post_ra>
// kernel: tpu_custom_call.1
= control target key start
LH: loop header
LB: loop body
LE: loop exit
PB: predicated region body
PF: predicated region fallthrough
CT: control target
= control target key end

     0   :  { %10 = vsyncpa [#allocation3], 0  ;;  %s1518_s0 = inlined_call_operand.vmem [shape: bf16[128,22], index: 0, kind: input, shape index: {}]   ;;  %s1519_s1 = inlined_call_operand.vmem [shape: bf16[22,512], index: 1, kind: input, shape index: {}]   ;;  %s1520_s2 = inlined_call_operand.vmem [shape: f32[1,512], index: 2, kind: input, shape index: {}]   ;;  %s1521_s3 = inlined_call_operand.hbm [shape: bf16[512,128], index: 3, kind: input, shape index: {}]   ;;  %s1522_s4 = inlined_call_operand.vmem [shape: f32[1,128], index: 4, kind: input, shape index: {}]   ;;  %s1523_s5 = inlined_call_operand.hbm [shape: f32[8,128], index: 5, kind: output, shape index: {}]  }
   0x1   :  { %11 = vsyncpa [#allocation4], 0  ;;  %s22_s20 = sshll.u32 %s1521_s3, 4  ;;  %s1292_s21 = smov [#allocation2]   ;;  %s23_s20 = int_to_ptr.hbm [resolvable:$true] %s22_s20 }
   0x2   :  { %s24_s22 = sshll.u32 %s1292_s21, 4  ;;  %s1293_s23 = smov 64   ;;  %s25_s22 = int_to_ptr.vmem [resolvable:$true] %s24_s22 }
   0x3   :  { %s1294_s24 = smov 4  }
   0x4   :  { %30 = dma.hbm_to_vmem [thread:$0]  %s23_s20, 4096, %s25_s22, [#allocation3], %s1293_s23, %s1293_s23, %s1294_s24  }
   0x5   :  { %1288 = dma.done.wait [#allocation3], 4096  }
   0x6   :  { %1289 = vsyncadd [#allocation3], 4294963200  ;;  %v58_v0 = vld [vmem:[%s1519_s1 + $0x20] sm:$0x77]  ;;  %v59_v1 = vld [vmem:[%s1519_s1 + $0x28] sm:$0x77] }
   0x7   :  { %v124_v2 = vunpack.c.l.b16 %v58_v0  ;;  %v125_v3 = vunpack.c.h.b16 %v58_v0  ;;  %v126_v4 = vunpack.c.l.b16 %v59_v1  ;;  %v127_v5 = vunpack.c.h.b16 %v59_v1  ;;  %v1015_v6 = vld [vmem:[%s1519_s1] sm:$0xf]  ;;  %v1199_v7 = vld [vmem:[%s1519_s1 + $0xc] sm:$0xf0]  ;;  %v1197_v12 = vld [vmem:[%s1519_s1 + $0x4] sm:$0xf] }
   0x8   :  { %vm165_vm0 = vcmask 1042432   ;;  %v1017_v13 = vld [vmem:[%s1519_s1 + $0x10] sm:$0xf0]  ;;  %v1023_v14 = vld [vmem:[%s1519_s1 + $0x8] sm:$0xf]  ;;  %v1016_v22 = vor.u32 %v1199_v7, %v1015_v6  ;;  %v1224_v26 = vld [vmem:[#allocation2 + $0xb8] sm:$0xff] }
   0x9   :  { %v132_v8 = vpack.c.b16 %v124_v2, %v124_v2  ;;  %v133_v9 = vpack.c.b16 %v125_v3, %v125_v3  ;;  %v134_v10 = vpack.c.b16 %v126_v4, %v126_v4  ;;  %v135_v11 = vpack.c.b16 %v127_v5, %v127_v5  ;;  %v1200_v15 = vld [vmem:[%s1519_s1 + $0x14] sm:$0xf0]  ;;  %v1198_v16 = vld [vmem:[%s1519_s1 + $0xc] sm:$0xf]  ;;  %v1025_v17 = vld [vmem:[%s1519_s1 + $0x18] sm:$0xf0] }
   0xa   :  { %v1020_v23 = vor.u32 %v1197_v12, %v1017_v13  ;;  %v1024_v24 = vor.u32 %v1200_v15, %v1023_v14  ;;  %v1028_v25 = vor.u32 %v1198_v16, %v1025_v17  ;;  %v1208_v27 = vld [vmem:[#allocation2 + $0x38] sm:$0xff]  ;;  %v1189_v28 = vld [vmem:[%s1518_s0] sm:$0xff]  ;;  %vm140_vm1 = vcmask 179200   ;;  %v1223_v31 = vld [vmem:[#allocation2 + $0xb0] sm:$0xff]  ;;  %s971_s13 = sshll.u32 %s1523_s5, 4  ;;  %s972_s13 = int_to_ptr.hbm [resolvable:$true] %s971_s13 }
   0xb   :  { %v167_v18 = vsel %vm165_vm0, %v132_v8, 0  ;;  %v170_v19 = vsel %vm165_vm0, %v133_v9, 0  ;;  %v173_v20 = vsel %vm165_vm0, %v134_v10, 0  ;;  %v176_v21 = vsel %vm165_vm0, %v135_v11, 0  ;;  %v1232_v29 = vld [vmem:[#allocation2 + $0xf8] sm:$0xff]  ;;  %v1207_v32 = vld [vmem:[#allocation2 + $0x30] sm:$0xff] }
   0xc   :  { %184 = vmatpush.bf16.msra.mxu0 %v167_v18  ;;  %233 = vmatpush.bf16.msra.mxu1 %v170_v19  ;;  %v1216_v30 = vld [vmem:[#allocation2 + $0x78] sm:$0xff]  ;;  %v1231_v33 = vld [vmem:[#allocation2 + $0xf0] sm:$0xff]  ;;  %v1190_v35 = vld [vmem:[%s1518_s0 + $0x8] sm:$0xff] }
   0xd   :  { %282 = vmatpush.bf16.msra.mxu2 %v173_v20  ;;  %331 = vmatpush.bf16.msra.mxu3 %v176_v21  ;;  %v1215_v34 = vld [vmem:[#allocation2 + $0x70] sm:$0xff]  ;;  %v1222_v36 = vld [vmem:[#allocation2 + $0xa8] sm:$0xff]  ;;  %v1221_v41 = vld [vmem:[#allocation2 + $0xa0] sm:$0xff] }
   0xe   :  { %v1206_v37 = vld [vmem:[#allocation2 + $0x28] sm:$0xff]  ;;  %v1191_v40 = vld [vmem:[%s1518_s0 + $0x10] sm:$0xff]  ;;  %v1205_v42 = vld [vmem:[#allocation2 + $0x20] sm:$0xff] }
   0xf   :  { %v1230_v38 = vld [vmem:[#allocation2 + $0xe8] sm:$0xff]  ;;  %v1229_v43 = vld [vmem:[#allocation2 + $0xe0] sm:$0xff]  ;;  %v1192_v45 = vld [vmem:[%s1518_s0 + $0x18] sm:$0xff] }
  0x10   :  { %185 = vmatpush.bf16.msra.mxu0 %v1016_v22  ;;  %234 = vmatpush.bf16.msra.mxu1 %v1020_v23  ;;  %v1214_v39 = vld [vmem:[#allocation2 + $0x68] sm:$0xff]  ;;  %v1213_v44 = vld [vmem:[#allocation2 + $0x60] sm:$0xff]  ;;  %v1220_v46 = vld [vmem:[#allocation2 + $0x98] sm:$0xff] }
  0x11   :  { %283 = vmatpush.bf16.msra.mxu2 %v1024_v24  ;;  %332 = vmatpush.bf16.msra.mxu3 %v1028_v25  ;;  %v1204_v47 = vld [vmem:[#allocation2 + $0x18] sm:$0xff]  ;;  %v1193_v50 = vld [vmem:[%s1518_s0 + $0x20] sm:$0xff]  ;;  %v1219_v51 = vld [vmem:[#allocation2 + $0x90] sm:$0xff] }
  0x12   :  { %v1228_v48 = vld [vmem:[#allocation2 + $0xd8] sm:$0xff]  ;;  %v1203_v52 = vld [vmem:[#allocation2 + $0x10] sm:$0xff]  ;;  %v1194_v55 = vld [vmem:[%s1518_s0 + $0x28] sm:$0xff] }
  0x13   :  { %1029 = vmatmul.msk.bf16.vlgmr.msra.gmra.mxu0 %vm140_vm1, %v1189_v28  ;;  %1037 = vmatmul.msk.bf16.vlgmr.msra.gmra.mxu1 %vm140_vm1, %v1189_v28  ;;  %v1212_v49 = vld [vmem:[#allocation2 + $0x58] sm:$0xff]  ;;  %v1227_v53 = vld [vmem:[#allocation2 + $0xd0] sm:$0xff]  ;;  %v1218_v56 = vld [vmem:[#allocation2 + $0x88] sm:$0xff] }
  0x14   :  { %730 = vmatpush.bf16.msrb.mxu0 %v1208_v27  ;;  %1045 = vmatmul.msk.bf16.vlgmr.msra.gmra.mxu2 %vm140_vm1, %v1189_v28  ;;  %v1211_v54 = vld [vmem:[#allocation2 + $0x50] sm:$0xff]  ;;  %v1202_v57 = vld [vmem:[#allocation2 + $0x8] sm:$0xff]  ;;  %v1217_v61 = vld [vmem:[#allocation2 + $0x80] sm:$0xff] }
  0x15   :  { %828 = vmatpush.bf16.msrb.mxu2 %v1224_v26  ;;  %1053 = vmatmul.msk.bf16.vlgmr.msra.gmra.mxu3 %vm140_vm1, %v1189_v28  ;;  %v1226_v58 = vld [vmem:[#allocation2 + $0xc8] sm:$0xff]  ;;  %v1195_v60 = vld [vmem:[%s1518_s0 + $0x30] sm:$0xff]  ;;  %v1201_v62 = vld [vmem:[#allocation2] sm:$0xff] }
  0x16   :  { %877 = vmatpush.bf16.msrb.mxu3 %v1232_v29  ;;  %779 = vmatpush.bf16.msrb.mxu1 %v1216_v30  ;;  %v1210_v59 = vld [vmem:[#allocation2 + $0x48] sm:$0xff]  ;;  %v1225_v63 = vld [vmem:[#allocation2 + $0xc0] sm:$0xff]  ;;  %v1196_v1 = vld [vmem:[%s1518_s0 + $0x38] sm:$0xff] }
  0x17   :  { %v1209_v0 = vld [vmem:[#allocation2 + $0x40] sm:$0xff] }
  0x18   :  { %731 = vmatpush.bf16.msrb.mxu0 %v1207_v32  ;;  %v60_v2 = vld [vmem:[%s1520_s2] sm:$0xf] }
  0x19   :  { %829 = vmatpush.bf16.msrb.mxu2 %v1223_v31  ;;  %v1422_v5 = vperm.slane %v60_v2, 0  ;;  %v1424_v6 = vperm.slane %v60_v2, 1  ;;  %v1430_v17 = vperm.slane %v60_v2, 2  ;;  %v1432_v18 = vperm.slane %v60_v2, 3 }
  0x1a   :  { %878 = vmatpush.bf16.msrb.mxu3 %v1231_v33  ;;  %780 = vmatpush.bf16.msrb.mxu1 %v1215_v34 }
  0x1c   :  { %732 = vmatpush.bf16.msrb.mxu0 %v1206_v37 }
  0x1d   :  { %830 = vmatpush.bf16.msrb.mxu2 %v1222_v36 }
  0x1e   :  { %879 = vmatpush.bf16.msrb.mxu3 %v1230_v38  ;;  %781 = vmatpush.bf16.msrb.mxu1 %v1214_v39 }
  0x20   :  { %733 = vmatpush.bf16.msrb.mxu0 %v1205_v42 }
  0x21   :  { %831 = vmatpush.bf16.msrb.mxu2 %v1221_v41 }
  0x22   :  { %880 = vmatpush.bf16.msrb.mxu3 %v1229_v43  ;;  %782 = vmatpush.bf16.msrb.mxu1 %v1213_v44 }
  0x23   :  { %1030 = vmatmul.msk.bf16.gmra.mxu0 %vm140_vm1, %v1190_v35  ;;  %1038 = vmatmul.msk.bf16.gmra.mxu1 %vm140_vm1, %v1190_v35 }
  0x24   :  { %1046 = vmatmul.msk.bf16.gmra.mxu2 %vm140_vm1, %v1190_v35  ;;  %734 = vmatpush.bf16.msrb.mxu0 %v1204_v47 }
  0x25   :  { %1054 = vmatmul.msk.bf16.gmra.mxu3 %vm140_vm1, %v1190_v35  ;;  %832 = vmatpush.bf16.msrb.mxu2 %v1220_v46 }
  0x26   :  { %881 = vmatpush.bf16.msrb.mxu3 %v1228_v48  ;;  %783 = vmatpush.bf16.msrb.mxu1 %v1212_v49 }
  0x28   :  { %735 = vmatpush.bf16.msrb.mxu0 %v1203_v52 }
  0x29   :  { %833 = vmatpush.bf16.msrb.mxu2 %v1219_v51 }
  0x2a   :  { %882 = vmatpush.bf16.msrb.mxu3 %v1227_v53  ;;  %784 = vmatpush.bf16.msrb.mxu1 %v1211_v54 }
  0x2c   :  { %736 = vmatpush.bf16.msrb.mxu0 %v1202_v57 }
  0x2d   :  { %834 = vmatpush.bf16.msrb.mxu2 %v1218_v56 }
  0x2e   :  { %883 = vmatpush.bf16.msrb.mxu3 %v1226_v58  ;;  %785 = vmatpush.bf16.msrb.mxu1 %v1210_v59 }
  0x30   :  { %737 = vmatpush.bf16.msrb.mxu0 %v1201_v62 }
  0x31   :  { %835 = vmatpush.bf16.msrb.mxu2 %v1217_v61 }
  0x32   :  { %884 = vmatpush.bf16.msrb.mxu3 %v1225_v63  ;;  %786 = vmatpush.bf16.msrb.mxu1 %v1209_v0 }
  0x33   :  { %1031 = vmatmul.msk.bf16.gmra.mxu0 %vm140_vm1, %v1191_v40  ;;  %1039 = vmatmul.msk.bf16.gmra.mxu1 %vm140_vm1, %v1191_v40 }
  0x34   :  { %1047 = vmatmul.msk.bf16.gmra.mxu2 %vm140_vm1, %v1191_v40 }
  0x35   :  { %1055 = vmatmul.msk.bf16.gmra.mxu3 %vm140_vm1, %v1191_v40 }
  0x43   :  { %1032 = vmatmul.msk.bf16.gmra.mxu0 %vm140_vm1, %v1192_v45  ;;  %1040 = vmatmul.msk.bf16.gmra.mxu1 %vm140_vm1, %v1192_v45 }
  0x44   :  { %1048 = vmatmul.msk.bf16.gmra.mxu2 %vm140_vm1, %v1192_v45 }
  0x45   :  { %1056 = vmatmul.msk.bf16.gmra.mxu3 %vm140_vm1, %v1192_v45 }
  0x53   :  { %1033 = vmatmul.msk.bf16.gmra.mxu0 %vm140_vm1, %v1193_v50  ;;  %1041 = vmatmul.msk.bf16.gmra.mxu1 %vm140_vm1, %v1193_v50 }
  0x54   :  { %1049 = vmatmul.msk.bf16.gmra.mxu2 %vm140_vm1, %v1193_v50 }
  0x55   :  { %1057 = vmatmul.msk.bf16.gmra.mxu3 %vm140_vm1, %v1193_v50 }
  0x63   :  { %1034 = vmatmul.msk.bf16.gmra.mxu0 %vm140_vm1, %v1194_v55  ;;  %1042 = vmatmul.msk.bf16.gmra.mxu1 %vm140_vm1, %v1194_v55 }
  0x64   :  { %1050 = vmatmul.msk.bf16.gmra.mxu2 %vm140_vm1, %v1194_v55 }
  0x65   :  { %1058 = vmatmul.msk.bf16.gmra.mxu3 %vm140_vm1, %v1194_v55 }
  0x73   :  { %1035 = vmatmul.msk.bf16.gmra.mxu0 %vm140_vm1, %v1195_v60  ;;  %1043 = vmatmul.msk.bf16.gmra.mxu1 %vm140_vm1, %v1195_v60 }
  0x74   :  { %1051 = vmatmul.msk.bf16.gmra.mxu2 %vm140_vm1, %v1195_v60 }
  0x75   :  { %1059 = vmatmul.msk.bf16.gmra.mxu3 %vm140_vm1, %v1195_v60 }
  0x83   :  { %1036 = vmatmul.msk.bf16.gmra.mxu0 %vm140_vm1, %v1196_v1  ;;  %1044 = vmatmul.msk.bf16.gmra.mxu1 %vm140_vm1, %v1196_v1 }
  0x84   :  { %1052 = vmatmul.msk.bf16.gmra.mxu2 %vm140_vm1, %v1196_v1 }
  0x85   :  { %1060 = vmatmul.msk.bf16.gmra.mxu3 %vm140_vm1, %v1196_v1 }
  0x90   :  { %v187_v3 = vpop.f32.mrf.mxu0  ;;  %v236_v4 = vpop.f32.mrf.mxu1 }
  0x91   :  { %v188_v7 = vadd.f32 %v187_v3, %v1422_v5  ;;  %v237_v8 = vadd.f32 %v236_v4, %v1424_v6 }
  0x93   :  { %v374_v13 = vmax.f32 %v188_v7, 0.0  ;;  %v375_v14 = vmax.f32 %v237_v8, 0.0 }
  0x97   :  { %v285_v9 = vpop.f32.mrf.mxu2 }
  0x98   :  { %v334_v10 = vpop.f32.mrf.mxu3  ;;  %v189_v11 = vpop.f32.mrf.mxu0  ;;  %v286_v23 = vadd.f32 %v285_v9, %v1430_v17 }
  0x99   :  { %v238_v12 = vpop.f32.mrf.mxu1  ;;  %v190_v15 = vadd.f32 %v189_v11, %v1422_v5  ;;  %v335_v24 = vadd.f32 %v334_v10, %v1432_v18 }
  0x9a   :  { %v239_v16 = vadd.f32 %v238_v12, %v1424_v6  ;;  %v376_v31 = vmax.f32 %v286_v23, 0.0 }
  0x9b   :  { %v378_v19 = vmax.f32 %v190_v15, 0.0  ;;  %v377_v32 = vmax.f32 %v335_v24, 0.0 }
  0x9c   :  { %v379_v20 = vmax.f32 %v239_v16, 0.0 }
  0x9d   :  { %v438_v21 = vpack.c.bf16 %v378_v19, %v374_v13 }
  0x9e   :  { %v439_v22 = vpack.c.bf16 %v379_v20, %v375_v14 }
  0x9f   :  { %v287_v25 = vpop.f32.mrf.mxu2  ;;  %738 = vmatmul.bf16.vlgmr.msrb.gmra.mxu0 %v438_v21 }
  0xa0   :  { %v336_v26 = vpop.f32.mrf.mxu3  ;;  %787 = vmatmul.bf16.vlgmr.msrb.gmra.mxu1 %v439_v22  ;;  %v288_v27 = vadd.f32 %v287_v25, %v1430_v17  ;;  %v192_v29 = vpop.f32.mrf.mxu0 }
  0xa1   :  { %v337_v28 = vadd.f32 %v336_v26, %v1432_v18  ;;  %v241_v30 = vpop.f32.mrf.mxu1  ;;  %v193_v37 = vadd.f32 %v192_v29, %v1422_v5 }
  0xa2   :  { %v380_v33 = vmax.f32 %v288_v27, 0.0  ;;  %v242_v38 = vadd.f32 %v241_v30, %v1424_v6 }
  0xa3   :  { %v381_v34 = vmax.f32 %v337_v28, 0.0  ;;  %v382_v43 = vmax.f32 %v193_v37, 0.0 }
  0xa4   :  { %v440_v35 = vpack.c.bf16 %v380_v33, %v376_v31  ;;  %v383_v44 = vmax.f32 %v242_v38, 0.0 }
  0xa5   :  { %v441_v36 = vpack.c.bf16 %v381_v34, %v377_v32 }
  0xa6   :  { %836 = vmatmul.bf16.vlgmr.msrb.gmra.mxu2 %v440_v35 }
  0xa7   :  { %885 = vmatmul.bf16.vlgmr.msrb.gmra.mxu3 %v441_v36  ;;  %v290_v39 = vpop.f32.mrf.mxu2 }
  0xa8   :  { %v339_v40 = vpop.f32.mrf.mxu3  ;;  %v194_v41 = vpop.f32.mrf.mxu0  ;;  %v291_v51 = vadd.f32 %v290_v39, %v1430_v17 }
  0xa9   :  { %v243_v42 = vpop.f32.mrf.mxu1  ;;  %v195_v45 = vadd.f32 %v194_v41, %v1422_v5  ;;  %v340_v52 = vadd.f32 %v339_v40, %v1432_v18 }
  0xaa   :  { %v244_v46 = vadd.f32 %v243_v42, %v1424_v6  ;;  %v384_v59 = vmax.f32 %v291_v51, 0.0 }
  0xab   :  { %v386_v47 = vmax.f32 %v195_v45, 0.0  ;;  %v385_v60 = vmax.f32 %v340_v52, 0.0 }
  0xac   :  { %v387_v48 = vmax.f32 %v244_v46, 0.0 }
  0xad   :  { %v442_v49 = vpack.c.bf16 %v386_v47, %v382_v43 }
  0xae   :  { %v443_v50 = vpack.c.bf16 %v387_v48, %v383_v44 }
  0xaf   :  { %v292_v53 = vpop.f32.mrf.mxu2  ;;  %743 = vmatmul.bf16.gmra.mxu0 %v442_v49 }
  0xb0   :  { %v341_v54 = vpop.f32.mrf.mxu3  ;;  %792 = vmatmul.bf16.gmra.mxu1 %v443_v50  ;;  %v293_v55 = vadd.f32 %v292_v53, %v1430_v17  ;;  %v197_v57 = vpop.f32.mrf.mxu0 }
  0xb1   :  { %v342_v56 = vadd.f32 %v341_v54, %v1432_v18  ;;  %v246_v58 = vpop.f32.mrf.mxu1  ;;  %v198_v1 = vadd.f32 %v197_v57, %v1422_v5 }
  0xb2   :  { %v388_v61 = vmax.f32 %v293_v55, 0.0  ;;  %v247_v2 = vadd.f32 %v246_v58, %v1424_v6 }
  0xb3   :  { %v389_v62 = vmax.f32 %v342_v56, 0.0  ;;  %v390_v9 = vmax.f32 %v198_v1, 0.0 }
  0xb4   :  { %v444_v63 = vpack.c.bf16 %v388_v61, %v384_v59  ;;  %v391_v10 = vmax.f32 %v247_v2, 0.0 }
  0xb5   :  { %v445_v0 = vpack.c.bf16 %v389_v62, %v385_v60 }
  0xb6   :  { %841 = vmatmul.bf16.gmra.mxu2 %v444_v63 }
  0xb7   :  { %890 = vmatmul.bf16.gmra.mxu3 %v445_v0  ;;  %v295_v3 = vpop.f32.mrf.mxu2 }
  0xb8   :  { %v344_v4 = vpop.f32.mrf.mxu3  ;;  %v199_v7 = vpop.f32.mrf.mxu0  ;;  %v296_v19 = vadd.f32 %v295_v3, %v1430_v17 }
  0xb9   :  { %v248_v8 = vpop.f32.mrf.mxu1  ;;  %v200_v11 = vadd.f32 %v199_v7, %v1422_v5  ;;  %v345_v20 = vadd.f32 %v344_v4, %v1432_v18 }
  0xba   :  { %v249_v12 = vadd.f32 %v248_v8, %v1424_v6  ;;  %v392_v27 = vmax.f32 %v296_v19, 0.0 }
  0xbb   :  { %v394_v13 = vmax.f32 %v200_v11, 0.0  ;;  %v393_v28 = vmax.f32 %v345_v20, 0.0 }
  0xbc   :  { %v395_v14 = vmax.f32 %v249_v12, 0.0 }
  0xbd   :  { %v446_v15 = vpack.c.bf16 %v394_v13, %v390_v9 }
  0xbe   :  { %v447_v16 = vpack.c.bf16 %v395_v14, %v391_v10 }
  0xbf   :  { %v297_v21 = vpop.f32.mrf.mxu2  ;;  %748 = vmatmul.bf16.gmra.mxu0 %v446_v15 }
  0xc0   :  { %v346_v22 = vpop.f32.mrf.mxu3  ;;  %797 = vmatmul.bf16.gmra.mxu1 %v447_v16  ;;  %v298_v23 = vadd.f32 %v297_v21, %v1430_v17  ;;  %v202_v25 = vpop.f32.mrf.mxu0 }
  0xc1   :  { %v347_v24 = vadd.f32 %v346_v22, %v1432_v18  ;;  %v251_v26 = vpop.f32.mrf.mxu1  ;;  %v203_v33 = vadd.f32 %v202_v25, %v1422_v5 }
  0xc2   :  { %v396_v29 = vmax.f32 %v298_v23, 0.0  ;;  %v252_v34 = vadd.f32 %v251_v26, %v1424_v6 }
  0xc3   :  { %v397_v30 = vmax.f32 %v347_v24, 0.0  ;;  %v398_v39 = vmax.f32 %v203_v33, 0.0 }
  0xc4   :  { %v448_v31 = vpack.c.bf16 %v396_v29, %v392_v27  ;;  %v399_v40 = vmax.f32 %v252_v34, 0.0 }
  0xc5   :  { %v449_v32 = vpack.c.bf16 %v397_v30, %v393_v28 }
  0xc6   :  { %846 = vmatmul.bf16.gmra.mxu2 %v448_v31 }
  0xc7   :  { %895 = vmatmul.bf16.gmra.mxu3 %v449_v32  ;;  %v300_v35 = vpop.f32.mrf.mxu2 }
  0xc8   :  { %v349_v36 = vpop.f32.mrf.mxu3  ;;  %v204_v37 = vpop.f32.mrf.mxu0  ;;  %v301_v47 = vadd.f32 %v300_v35, %v1430_v17 }
  0xc9   :  { %v253_v38 = vpop.f32.mrf.mxu1  ;;  %v205_v41 = vadd.f32 %v204_v37, %v1422_v5  ;;  %v350_v48 = vadd.f32 %v349_v36, %v1432_v18 }
  0xca   :  { %v254_v42 = vadd.f32 %v253_v38, %v1424_v6  ;;  %v400_v55 = vmax.f32 %v301_v47, 0.0 }
  0xcb   :  { %v402_v43 = vmax.f32 %v205_v41, 0.0  ;;  %v401_v56 = vmax.f32 %v350_v48, 0.0 }
  0xcc   :  { %v403_v44 = vmax.f32 %v254_v42, 0.0 }
  0xcd   :  { %v450_v45 = vpack.c.bf16 %v402_v43, %v398_v39 }
  0xce   :  { %v451_v46 = vpack.c.bf16 %v403_v44, %v399_v40 }
  0xcf   :  { %v302_v49 = vpop.f32.mrf.mxu2  ;;  %753 = vmatmul.bf16.gmra.mxu0 %v450_v45 }
  0xd0   :  { %v351_v50 = vpop.f32.mrf.mxu3  ;;  %802 = vmatmul.bf16.gmra.mxu1 %v451_v46  ;;  %v303_v51 = vadd.f32 %v302_v49, %v1430_v17  ;;  %v207_v53 = vpop.f32.mrf.mxu0 }
  0xd1   :  { %v352_v52 = vadd.f32 %v351_v50, %v1432_v18  ;;  %v256_v54 = vpop.f32.mrf.mxu1  ;;  %v208_v61 = vadd.f32 %v207_v53, %v1422_v5 }
  0xd2   :  { %v404_v57 = vmax.f32 %v303_v51, 0.0  ;;  %v257_v62 = vadd.f32 %v256_v54, %v1424_v6 }
  0xd3   :  { %v405_v58 = vmax.f32 %v352_v52, 0.0  ;;  %v406_v3 = vmax.f32 %v208_v61, 0.0 }
  0xd4   :  { %v452_v59 = vpack.c.bf16 %v404_v57, %v400_v55  ;;  %v407_v4 = vmax.f32 %v257_v62, 0.0 }
  0xd5   :  { %v453_v60 = vpack.c.bf16 %v405_v58, %v401_v56 }
  0xd6   :  { %851 = vmatmul.bf16.gmra.mxu2 %v452_v59 }
  0xd7   :  { %900 = vmatmul.bf16.gmra.mxu3 %v453_v60  ;;  %v305_v63 = vpop.f32.mrf.mxu2 }
  0xd8   :  { %v354_v0 = vpop.f32.mrf.mxu3  ;;  %v209_v1 = vpop.f32.mrf.mxu0  ;;  %v306_v13 = vadd.f32 %v305_v63, %v1430_v17 }
  0xd9   :  { %v258_v2 = vpop.f32.mrf.mxu1  ;;  %v210_v7 = vadd.f32 %v209_v1, %v1422_v5  ;;  %v355_v14 = vadd.f32 %v354_v0, %v1432_v18 }
  0xda   :  { %v259_v8 = vadd.f32 %v258_v2, %v1424_v6  ;;  %v408_v23 = vmax.f32 %v306_v13, 0.0 }
  0xdb   :  { %v410_v9 = vmax.f32 %v210_v7, 0.0  ;;  %v409_v24 = vmax.f32 %v355_v14, 0.0 }
  0xdc   :  { %v411_v10 = vmax.f32 %v259_v8, 0.0 }
  0xdd   :  { %v454_v11 = vpack.c.bf16 %v410_v9, %v406_v3 }
  0xde   :  { %v455_v12 = vpack.c.bf16 %v411_v10, %v407_v4 }
  0xdf   :  { %v307_v15 = vpop.f32.mrf.mxu2  ;;  %758 = vmatmul.bf16.gmra.mxu0 %v454_v11 }
  0xe0   :  { %v356_v16 = vpop.f32.mrf.mxu3  ;;  %807 = vmatmul.bf16.gmra.mxu1 %v455_v12  ;;  %v308_v19 = vadd.f32 %v307_v15, %v1430_v17  ;;  %v212_v21 = vpop.f32.mrf.mxu0 }
  0xe1   :  { %v357_v20 = vadd.f32 %v356_v16, %v1432_v18  ;;  %v261_v22 = vpop.f32.mrf.mxu1  ;;  %v213_v29 = vadd.f32 %v212_v21, %v1422_v5 }
  0xe2   :  { %v412_v25 = vmax.f32 %v308_v19, 0.0  ;;  %v262_v30 = vadd.f32 %v261_v22, %v1424_v6 }
  0xe3   :  { %v413_v26 = vmax.f32 %v357_v20, 0.0  ;;  %v414_v35 = vmax.f32 %v213_v29, 0.0 }
  0xe4   :  { %v456_v27 = vpack.c.bf16 %v412_v25, %v408_v23  ;;  %v415_v36 = vmax.f32 %v262_v30, 0.0 }
  0xe5   :  { %v457_v28 = vpack.c.bf16 %v413_v26, %v409_v24 }
  0xe6   :  { %856 = vmatmul.bf16.gmra.mxu2 %v456_v27 }
  0xe7   :  { %905 = vmatmul.bf16.gmra.mxu3 %v457_v28  ;;  %v310_v31 = vpop.f32.mrf.mxu2 }
  0xe8   :  { %v359_v32 = vpop.f32.mrf.mxu3  ;;  %v214_v33 = vpop.f32.mrf.mxu0  ;;  %v311_v43 = vadd.f32 %v310_v31, %v1430_v17 }
  0xe9   :  { %v263_v34 = vpop.f32.mrf.mxu1  ;;  %v215_v37 = vadd.f32 %v214_v33, %v1422_v5  ;;  %v360_v44 = vadd.f32 %v359_v32, %v1432_v18 }
  0xea   :  { %v264_v38 = vadd.f32 %v263_v34, %v1424_v6  ;;  %v416_v51 = vmax.f32 %v311_v43, 0.0 }
  0xeb   :  { %v418_v39 = vmax.f32 %v215_v37, 0.0  ;;  %v417_v52 = vmax.f32 %v360_v44, 0.0 }
  0xec   :  { %v419_v40 = vmax.f32 %v264_v38, 0.0 }
  0xed   :  { %v458_v41 = vpack.c.bf16 %v418_v39, %v414_v35 }
  0xee   :  { %v459_v42 = vpack.c.bf16 %v419_v40, %v415_v36 }
  0xef   :  { %v312_v45 = vpop.f32.mrf.mxu2  ;;  %763 = vmatmul.bf16.gmra.mxu0 %v458_v41 }
  0xf0   :  { %v361_v46 = vpop.f32.mrf.mxu3  ;;  %812 = vmatmul.bf16.gmra.mxu1 %v459_v42  ;;  %v313_v47 = vadd.f32 %v312_v45, %v1430_v17  ;;  %v217_v49 = vpop.f32.mrf.mxu0 }
  0xf1   :  { %v362_v48 = vadd.f32 %v361_v46, %v1432_v18  ;;  %v266_v50 = vpop.f32.mrf.mxu1  ;;  %v218_v57 = vadd.f32 %v217_v49, %v1422_v5 }
  0xf2   :  { %v420_v53 = vmax.f32 %v313_v47, 0.0  ;;  %v267_v58 = vadd.f32 %v266_v50, %v1424_v6 }
  0xf3   :  { %v421_v54 = vmax.f32 %v362_v48, 0.0  ;;  %v422_v63 = vmax.f32 %v218_v57, 0.0 }
  0xf4   :  { %v460_v55 = vpack.c.bf16 %v420_v53, %v416_v51  ;;  %v423_v0 = vmax.f32 %v267_v58, 0.0  ;;  %v1497_v51 = vld [vmem:[%s1522_s4] ss:$0 sm:$0xff]  ;;  %s1295_s4 = smov [#allocation5]  }
  0xf5   :  { %v461_v56 = vpack.c.bf16 %v421_v54, %v417_v52  ;;  %s969_s10 = sshll.u32 %s1295_s4, 4  ;;  %s970_s10 = int_to_ptr.vmem [resolvable:$true] %s969_s10 }
  0xf6   :  { %861 = vmatmul.bf16.gmra.mxu2 %v460_v55 }
  0xf7   :  { %910 = vmatmul.bf16.gmra.mxu3 %v461_v56  ;;  %v315_v59 = vpop.f32.mrf.mxu2 }
  0xf8   :  { %v364_v60 = vpop.f32.mrf.mxu3  ;;  %v219_v61 = vpop.f32.mrf.mxu0  ;;  %v316_v9 = vadd.f32 %v315_v59, %v1430_v17 }
  0xf9   :  { %v268_v62 = vpop.f32.mrf.mxu1  ;;  %v220_v1 = vadd.f32 %v219_v61, %v1422_v5  ;;  %v365_v10 = vadd.f32 %v364_v60, %v1432_v18 }
  0xfa   :  { %v269_v2 = vadd.f32 %v268_v62, %v1424_v6  ;;  %v424_v19 = vmax.f32 %v316_v9, 0.0 }
  0xfb   :  { %v426_v3 = vmax.f32 %v220_v1, 0.0  ;;  %v425_v20 = vmax.f32 %v365_v10, 0.0 }
  0xfc   :  { %v427_v4 = vmax.f32 %v269_v2, 0.0 }
  0xfd   :  { %v462_v7 = vpack.c.bf16 %v426_v3, %v422_v63 }
  0xfe   :  { %v463_v8 = vpack.c.bf16 %v427_v4, %v423_v0 }
  0xff   :  { %v317_v11 = vpop.f32.mrf.mxu2  ;;  %768 = vmatmul.bf16.gmra.mxu0 %v462_v7 }
 0x100   :  { %v366_v12 = vpop.f32.mrf.mxu3  ;;  %817 = vmatmul.bf16.gmra.mxu1 %v463_v8  ;;  %v318_v13 = vadd.f32 %v317_v11, %v1430_v17  ;;  %v222_v15 = vpop.f32.mrf.mxu0 }
 0x101   :  { %v367_v14 = vadd.f32 %v366_v12, %v1432_v18  ;;  %v271_v16 = vpop.f32.mrf.mxu1  ;;  %v223_v25 = vadd.f32 %v222_v15, %v1422_v5 }
 0x102   :  { %v428_v21 = vmax.f32 %v318_v13, 0.0  ;;  %v272_v26 = vadd.f32 %v271_v16, %v1424_v6 }
 0x103   :  { %v429_v22 = vmax.f32 %v367_v14, 0.0  ;;  %v430_v31 = vmax.f32 %v223_v25, 0.0 }
 0x104   :  { %v464_v23 = vpack.c.bf16 %v428_v21, %v424_v19  ;;  %v431_v32 = vmax.f32 %v272_v26, 0.0 }
 0x105   :  { %v465_v24 = vpack.c.bf16 %v429_v22, %v425_v20 }
 0x106   :  { %866 = vmatmul.bf16.gmra.mxu2 %v464_v23 }
 0x107   :  { %915 = vmatmul.bf16.gmra.mxu3 %v465_v24  ;;  %v320_v27 = vpop.f32.mrf.mxu2 }
 0x108   :  { %v369_v28 = vpop.f32.mrf.mxu3  ;;  %v224_v29 = vpop.f32.mrf.mxu0  ;;  %v321_v39 = vadd.f32 %v320_v27, %v1430_v17 }
 0x109   :  { %v273_v30 = vpop.f32.mrf.mxu1  ;;  %v225_v33 = vadd.f32 %v224_v29, %v1422_v5  ;;  %v370_v40 = vadd.f32 %v369_v28, %v1432_v18 }
 0x10a   :  { %v274_v34 = vadd.f32 %v273_v30, %v1424_v6  ;;  %v432_v45 = vmax.f32 %v321_v39, 0.0 }
 0x10b   :  { %v434_v35 = vmax.f32 %v225_v33, 0.0  ;;  %v433_v5 = vmax.f32 %v370_v40, 0.0 }
 0x10c   :  { %v435_v36 = vmax.f32 %v274_v34, 0.0 }
 0x10d   :  { %v466_v37 = vpack.c.bf16 %v434_v35, %v430_v31 }
 0x10e   :  { %v467_v38 = vpack.c.bf16 %v435_v36, %v431_v32 }
 0x10f   :  { %v322_v41 = vpop.f32.mrf.mxu2  ;;  %773 = vmatmul.bf16.gmra.mxu0 %v466_v37 }
 0x110   :  { %v371_v42 = vpop.f32.mrf.mxu3  ;;  %822 = vmatmul.bf16.gmra.mxu1 %v467_v38  ;;  %v323_v43 = vadd.f32 %v322_v41, %v1430_v17 }
 0x111   :  { %v372_v44 = vadd.f32 %v371_v42, %v1432_v18 }
 0x112   :  { %v436_v46 = vmax.f32 %v323_v43, 0.0 }
 0x113   :  { %v437_v6 = vmax.f32 %v372_v44, 0.0 }
 0x114   :  { %v468_v47 = vpack.c.bf16 %v436_v46, %v432_v45 }
 0x115   :  { %v469_v48 = vpack.c.bf16 %v437_v6, %v433_v5 }
 0x116   :  { %871 = vmatmul.bf16.gmra.mxu2 %v468_v47 }
 0x117   :  { %920 = vmatmul.bf16.gmra.mxu3 %v469_v48 }
 0x11c   :  { %v739_v49 = vpop.f32.mrf.mxu0 }
 0x11d   :  { %v788_v50 = vpop.f32.mrf.mxu1  ;;  %v740_v52 = vadd.f32 %v1497_v51, %v739_v49 }
 0x11f   :  { %v789_v18 = vadd.f32 %v788_v50, %v740_v52 }
 0x124   :  { %v741_v17 = vpop.f32.mrf.mxu0 }
 0x125   :  { %v790_v53 = vpop.f32.mrf.mxu1  ;;  %v742_v57 = vadd.f32 %v1497_v51, %v741_v17 }
 0x127   :  { %v791_v61 = vadd.f32 %v790_v53, %v742_v57 }
 0x129   :  { %v837_v54 = vpop.f32.mrf.mxu2 }
 0x12a   :  { %v886_v55 = vpop.f32.mrf.mxu3  ;;  %v838_v56 = vadd.f32 %v837_v54, %v789_v18 }
 0x12c   :  { %v744_v58 = vpop.f32.mrf.mxu0  ;;  %v887_v60 = vadd.f32 %v886_v55, %v838_v56 }
 0x12d   :  { %v793_v59 = vpop.f32.mrf.mxu1  ;;  %v745_v1 = vadd.f32 %v1497_v51, %v744_v58 }
 0x12e   :  { %926 = vxpose.xlu0.b32.start [1/16] (narrow) %v887_v60, 8 }
 0x12f   :  { %v794_v7 = vadd.f32 %v793_v59, %v745_v1 }
 0x131   :  { %v839_v62 = vpop.f32.mrf.mxu2 }
 0x132   :  { %v888_v63 = vpop.f32.mrf.mxu3  ;;  %v840_v0 = vadd.f32 %v839_v62, %v791_v61 }
 0x134   :  { %v889_v2 = vadd.f32 %v888_v63, %v840_v0  ;;  %v746_v3 = vpop.f32.mrf.mxu0 }
 0x135   :  { %v795_v4 = vpop.f32.mrf.mxu1  ;;  %v747_v11 = vadd.f32 %v1497_v51, %v746_v3 }
 0x136   :  { %927 = vxpose.xlu0.b32.cont [2/16] (narrow) %v889_v2, 8 }
 0x137   :  { %v796_v15 = vadd.f32 %v795_v4, %v747_v11 }
 0x139   :  { %v842_v8 = vpop.f32.mrf.mxu2 }
 0x13a   :  { %v891_v9 = vpop.f32.mrf.mxu3  ;;  %v843_v10 = vadd.f32 %v842_v8, %v794_v7 }
 0x13c   :  { %v892_v12 = vadd.f32 %v891_v9, %v843_v10  ;;  %v749_v13 = vpop.f32.mrf.mxu0 }
 0x13d   :  { %v798_v14 = vpop.f32.mrf.mxu1  ;;  %v750_v21 = vadd.f32 %v1497_v51, %v749_v13 }
 0x13e   :  { %928 = vxpose.xlu0.b32.cont [3/16] (narrow) %v892_v12, 8 }
 0x13f   :  { %v799_v25 = vadd.f32 %v798_v14, %v750_v21 }
 0x141   :  { %v844_v16 = vpop.f32.mrf.mxu2 }
 0x142   :  { %v893_v19 = vpop.f32.mrf.mxu3  ;;  %v845_v20 = vadd.f32 %v844_v16, %v796_v15 }
 0x144   :  { %v894_v22 = vadd.f32 %v893_v19, %v845_v20  ;;  %v751_v23 = vpop.f32.mrf.mxu0 }
 0x145   :  { %v800_v24 = vpop.f32.mrf.mxu1  ;;  %v752_v29 = vadd.f32 %v1497_v51, %v751_v23 }
 0x146   :  { %929 = vxpose.xlu0.b32.cont [4/16] (narrow) %v894_v22, 8 }
 0x147   :  { %v801_v33 = vadd.f32 %v800_v24, %v752_v29 }
 0x149   :  { %v847_v26 = vpop.f32.mrf.mxu2 }
 0x14a   :  { %v896_v27 = vpop.f32.mrf.mxu3  ;;  %v848_v28 = vadd.f32 %v847_v26, %v799_v25 }
 0x14c   :  { %v897_v30 = vadd.f32 %v896_v27, %v848_v28  ;;  %v754_v31 = vpop.f32.mrf.mxu0 }
 0x14d   :  { %v803_v32 = vpop.f32.mrf.mxu1  ;;  %v755_v37 = vadd.f32 %v1497_v51, %v754_v31 }
 0x14e   :  { %930 = vxpose.xlu0.b32.cont [5/16] (narrow) %v897_v30, 8 }
 0x14f   :  { %v804_v41 = vadd.f32 %v803_v32, %v755_v37 }
 0x151   :  { %v849_v34 = vpop.f32.mrf.mxu2 }
 0x152   :  { %v898_v35 = vpop.f32.mrf.mxu3  ;;  %v850_v36 = vadd.f32 %v849_v34, %v801_v33 }
 0x154   :  { %v899_v38 = vadd.f32 %v898_v35, %v850_v36  ;;  %v756_v39 = vpop.f32.mrf.mxu0 }
 0x155   :  { %v805_v40 = vpop.f32.mrf.mxu1  ;;  %v757_v45 = vadd.f32 %v1497_v51, %v756_v39 }
 0x156   :  { %931 = vxpose.xlu0.b32.cont [6/16] (narrow) %v899_v38, 8 }
 0x157   :  { %v806_v47 = vadd.f32 %v805_v40, %v757_v45 }
 0x159   :  { %v852_v42 = vpop.f32.mrf.mxu2 }
 0x15a   :  { %v901_v43 = vpop.f32.mrf.mxu3  ;;  %v853_v44 = vadd.f32 %v852_v42, %v804_v41 }
 0x15c   :  { %v902_v5 = vadd.f32 %v901_v43, %v853_v44  ;;  %v759_v46 = vpop.f32.mrf.mxu0 }
 0x15d   :  { %v808_v6 = vpop.f32.mrf.mxu1  ;;  %v760_v52 = vadd.f32 %v1497_v51, %v759_v46 }
 0x15e   :  { %932 = vxpose.xlu0.b32.cont [7/16] (narrow) %v902_v5, 8 }
 0x15f   :  { %v809_v54 = vadd.f32 %v808_v6, %v760_v52  ;;  %v958_v52 = vlaneseq }
 0x161   :  { %v854_v48 = vpop.f32.mrf.mxu2 }
 0x162   :  { %v903_v49 = vpop.f32.mrf.mxu3  ;;  %v855_v50 = vadd.f32 %v854_v48, %v806_v47 }
 0x164   :  { %v904_v17 = vadd.f32 %v903_v49, %v855_v50  ;;  %v761_v53 = vpop.f32.mrf.mxu0 }
 0x165   :  { %v810_v18 = vpop.f32.mrf.mxu1  ;;  %v762_v58 = vadd.f32 %v1497_v51, %v761_v53  ;;  %v959_v53 = vshrl.u32 %v958_v52, 7 }
 0x166   :  { %933 = vxpose.xlu0.b32.cont [8/16] (narrow) %v904_v17, 8 }
 0x167   :  { %v811_v62 = vadd.f32 %v810_v18, %v762_v58  ;;  %vm960_vm2 = vcmp.eq.s32.totalorder %v959_v53, 0 }
 0x169   :  { %v857_v55 = vpop.f32.mrf.mxu2 }
 0x16a   :  { %v906_v56 = vpop.f32.mrf.mxu3  ;;  %v858_v57 = vadd.f32 %v857_v55, %v809_v54 }
 0x16c   :  { %v907_v59 = vadd.f32 %v906_v56, %v858_v57  ;;  %v764_v60 = vpop.f32.mrf.mxu0 }
 0x16d   :  { %v813_v61 = vpop.f32.mrf.mxu1  ;;  %v765_v2 = vadd.f32 %v1497_v51, %v764_v60 }
 0x16e   :  { %934 = vxpose.xlu0.b32.cont [9/16] (narrow) %v907_v59, 8 }
 0x16f   :  { %v814_v8 = vadd.f32 %v813_v61, %v765_v2 }
 0x171   :  { %v859_v63 = vpop.f32.mrf.mxu2 }
 0x172   :  { %v908_v0 = vpop.f32.mrf.mxu3  ;;  %v860_v1 = vadd.f32 %v859_v63, %v811_v62 }
 0x174   :  { %v909_v3 = vadd.f32 %v908_v0, %v860_v1  ;;  %v766_v4 = vpop.f32.mrf.mxu0 }
 0x175   :  { %v815_v7 = vpop.f32.mrf.mxu1  ;;  %v767_v12 = vadd.f32 %v1497_v51, %v766_v4 }
 0x176   :  { %935 = vxpose.xlu0.b32.cont [10/16] (narrow) %v909_v3, 8 }
 0x177   :  { %v816_v15 = vadd.f32 %v815_v7, %v767_v12 }
 0x179   :  { %v862_v9 = vpop.f32.mrf.mxu2 }
 0x17a   :  { %v911_v10 = vpop.f32.mrf.mxu3  ;;  %v863_v11 = vadd.f32 %v862_v9, %v814_v8 }
 0x17c   :  { %v912_v13 = vadd.f32 %v911_v10, %v863_v11  ;;  %v769_v14 = vpop.f32.mrf.mxu0 }
 0x17d   :  { %v818_v16 = vpop.f32.mrf.mxu1  ;;  %v770_v22 = vadd.f32 %v1497_v51, %v769_v14 }
 0x17e   :  { %936 = vxpose.xlu0.b32.cont [11/16] (narrow) %v912_v13, 8 }
 0x17f   :  { %v819_v25 = vadd.f32 %v818_v16, %v770_v22 }
 0x181   :  { %v864_v19 = vpop.f32.mrf.mxu2 }
 0x182   :  { %v913_v20 = vpop.f32.mrf.mxu3  ;;  %v865_v21 = vadd.f32 %v864_v19, %v816_v15 }
 0x184   :  { %v914_v23 = vadd.f32 %v913_v20, %v865_v21  ;;  %v771_v24 = vpop.f32.mrf.mxu0 }
 0x185   :  { %v820_v29 = vpop.f32.mrf.mxu1  ;;  %v772_v30 = vadd.f32 %v1497_v51, %v771_v24 }
 0x186   :  { %937 = vxpose.xlu0.b32.cont [12/16] (narrow) %v914_v23, 8 }
 0x187   :  { %v821_v33 = vadd.f32 %v820_v29, %v772_v30 }
 0x189   :  { %v867_v26 = vpop.f32.mrf.mxu2 }
 0x18a   :  { %v916_v27 = vpop.f32.mrf.mxu3  ;;  %v868_v28 = vadd.f32 %v867_v26, %v819_v25 }
 0x18c   :  { %v917_v31 = vadd.f32 %v916_v27, %v868_v28  ;;  %v774_v32 = vpop.f32.mrf.mxu0 }
 0x18d   :  { %v775_v37 = vadd.f32 %v1497_v51, %v774_v32  ;;  %v823_v39 = vpop.f32.mrf.mxu1 }
 0x18e   :  { %938 = vxpose.xlu0.b32.cont [13/16] (narrow) %v917_v31, 8 }
 0x18f   :  { %v824_v40 = vadd.f32 %v823_v39, %v775_v37 }
 0x191   :  { %v869_v34 = vpop.f32.mrf.mxu2 }
 0x192   :  { %v918_v35 = vpop.f32.mrf.mxu3  ;;  %v870_v36 = vadd.f32 %v869_v34, %v821_v33 }
 0x194   :  { %v919_v38 = vadd.f32 %v918_v35, %v870_v36  ;;  %v776_v41 = vpop.f32.mrf.mxu0 }
 0x195   :  { %v777_v45 = vadd.f32 %v1497_v51, %v776_v41  ;;  %v825_v46 = vpop.f32.mrf.mxu1 }
 0x196   :  { %939 = vxpose.xlu0.b32.cont [14/16] (narrow) %v919_v38, 8 }
 0x197   :  { %v826_v6 = vadd.f32 %v825_v46, %v777_v45 }
 0x199   :  { %v872_v42 = vpop.f32.mrf.mxu2 }
 0x19a   :  { %v921_v43 = vpop.f32.mrf.mxu3  ;;  %v873_v44 = vadd.f32 %v872_v42, %v824_v40 }
 0x19c   :  { %v922_v5 = vadd.f32 %v921_v43, %v873_v44 }
 0x19e   :  { %940 = vxpose.xlu0.b32.cont [15/16] (narrow) %v922_v5, 8 }
 0x1a1   :  { %v874_v47 = vpop.f32.mrf.mxu2 }
 0x1a2   :  { %v875_v48 = vadd.f32 %v874_v47, %v826_v6  ;;  %v923_v49 = vpop.f32.mrf.mxu3 }
 0x1a4   :  { %v924_v50 = vadd.f32 %v923_v49, %v875_v48 }
 0x1a6   :  { %941 = vxpose.xlu0.b32.end [16/16] (narrow) %v924_v50, 8 }
 0x1d2   :  { %v942_v17 = vpop.trf.xlu0 }
 0x1d3   :  { %1238 = vtanh.f32 %v942_v17 }
 0x1d9   :  { %v1239_v51 = vpop.eup %1238 }
 0x1da   :  { %v962_v18 = vsel %vm960_vm2, %v942_v17, %v1239_v51 }
 0x1db   :  { %963 = vst [vmem:[#allocation5] sm:$0xff] %v962_v18 }
 0x1dc   :  { %974 = dma.vmem_to_hbm [thread:$0]  %s970_s10, 128, %s972_s13, [#allocation4]  }
 0x1dd   :  { %1290 = dma.done.wait [#allocation4], 128  }
 0x1de   :  { %1291 = vsyncadd [#allocation4], 4294967168 }
 0x1df   :  { %979 = vsyncpa [#allocation3], 1 }
 0x1e0   :  { %980 = vsyncpa [#allocation4], 1 }

</bundles_post_ra>
